<compile_context>
chip_gen: v7x
topology: tpu7x:2x2x1
jax: 0.10.0
libtpu: 0.0.40
codegen_flags: <defaults>
</compile_context>

<pallas_src>
import jax
import jax.numpy as jnp
from jax.experimental import pallas as pl
from jax.experimental.pallas import tpu as pltpu


LANE = 128
V7X_VMEM_CAP = 48 << 20        # stay well under v7x's 64 MiB physical VMEM
TILE_BUDGET = 12 << 20         # per-step working-set budget used by the bb chooser


def _round_up(x, m):
    return ((x + m - 1) // m) * m


# ----------------------------------------------------------------------------
# Fused kernel: 3x3 SAME conv (im2col matmul) + bias + ReLU + global avg pool
#               + fused 4-head linear, one grid step per batch block.
# ----------------------------------------------------------------------------
def _make_kernel(bb, hw):
    def kernel(p_ref, wc_ref, bc_ref, wh_ref, bh_ref, o_ref):
        # p_ref : (bb*HW, K)   bf16 im2col patches, K = 9*Cin (UNPADDED)
        # wc_ref: (K, Cp)      bf16 conv weights (Cout zero-padded to Cp=128)
        # bc_ref: (1, Cp)      f32 conv bias (zero-padded)
        # wh_ref: (Cp, Np)     bf16 fused head weights, pre-scaled by 1/HW
        # bh_ref: (1, Np)      f32 fused head bias
        # o_ref : (1, bb, Np)  f32 head outputs (first 4 lanes meaningful)
        cp = wc_ref.shape[-1]

        # Conv as ONE MXU matmul over the whole batch block (M = bb*HW), f32 acc.
        y = jnp.dot(p_ref[...], wc_ref[...], preferred_element_type=jnp.float32)
        # NOTE: correctness of the zero-padded Cout lanes relies on zero-padded
        # conv bias / head-weight rows and ReLU(0) == 0.
        y = jnp.maximum(y + bc_ref[...], 0.0)                      # bias + ReLU

        # Global average pool per image: XLU sublane reduce over HW.
        # (The 1/HW scale is folded into wh in the wrapper.)
        feats = jnp.sum(y.reshape(bb, hw, cp), axis=1)             # (bb, Cp) f32

        # Fused 4 linear heads while feats is still resident in VMEM:
        # single-pass bf16 MXU dot, f32 accumulation.
        out = jnp.dot(feats.astype(wh_ref.dtype), wh_ref[...],
                      preferred_element_type=jnp.float32)          # (bb, Np)
        o_ref[...] = (out + bh_ref[...])[None, :, :].astype(o_ref.dtype)

    return kernel


def _choose_batch_block(batch, hw, k, cp):
    """Pick bb so the per-step tile fits the VMEM budget and grid >= min(4, B)."""
    # Dominant per-image VMEM terms: bf16 patch tile + f32 conv intermediate.
    per_image = hw * k * 2 + hw * cp * 4
    bb_cap = max(1, TILE_BUDGET // per_image)
    target_grid = min(4, batch)                 # enough steps to pipeline / 2-TC shard
    bb = max(1, min(bb_cap, batch // target_grid))
    while batch % bb:                           # always a divisor -> no ragged batch
        bb -= 1
    return bb


def _vmem_limit_bytes(bb, hw, k, cp, npad):
    patches_tile = bb * hw * k * 2              # bf16, double-buffered
    y_f32 = bb * hw * cp * 4                    # conv intermediate
    weights = k * cp * 2 + cp * 4 + cp * npad * 2 + npad * 4   # single-buffered
    out_tile = bb * npad * 4                    # double-buffered
    working_set = 2 * patches_tile + y_f32 + weights + 2 * out_tile
    return int(min(V7X_VMEM_CAP, max(32 << 20, 2 * working_set)))


def run_ox_fused(patches, wc, bc, wh, bh, *, batch, hw, batch_block=None):
    M, K = patches.shape
    assert M == batch * hw, (M, batch, hw)
    Cp = wc.shape[1]
    Np = wh.shape[1]

    bb = _choose_batch_block(batch, hw, K, Cp) if batch_block is None else batch_block
    assert batch % bb == 0, (batch, bb)
    grid = batch // bb

    const2 = lambda i: (0, 0)
    out3 = pl.pallas_call(
        _make_kernel(bb, hw),
        out_shape=jax.ShapeDtypeStruct((grid, bb, Np), jnp.float32),
        grid=(grid,),
        in_specs=[
            # M tiled by batch block; K left at its true (unpadded) size.
            pl.BlockSpec((bb * hw, K), lambda i: (i, 0)),
            # Constant-index weights/biases: single-buffered (no wasted VMEM).
            pl.BlockSpec((K, Cp), const2, pipeline_mode=pl.Buffered(1)),
            pl.BlockSpec((1, Cp), const2, pipeline_mode=pl.Buffered(1)),
            pl.BlockSpec((Cp, Np), const2, pipeline_mode=pl.Buffered(1)),
            pl.BlockSpec((1, Np), const2, pipeline_mode=pl.Buffered(1)),
        ],
        # Per-grid-step output block (lane-dense, unmasked stores).
        out_specs=pl.BlockSpec((1, bb, Np), lambda i: (i, 0, 0)),
        compiler_params=pltpu.CompilerParams(
            dimension_semantics=("parallel",),
            vmem_limit_bytes=_vmem_limit_bytes(bb, hw, K, Cp, Np)),
    )(patches, wc, bc, wh, bh)
    return out3.reshape(batch, Np)


# ----------------------------------------------------------------------------
# Wrapper-side glue (im2col, NO K padding), fused by XLA under jit.
# TODO(synk): at production sizes move the NCHW->NHWC transpose and the im2col tap
# construction in-kernel (raw image DMA + shifted slices) to kill the 9x HBM blow-up.
# ----------------------------------------------------------------------------
def _im2col_3x3(x_nhwc):
    B, H, W, C = x_nhwc.shape
    xp = jnp.pad(x_nhwc, ((0, 0), (1, 1), (1, 1), (0, 0)))   # padding=1 (SAME)
    taps = [xp[:, kh:kh + H, kw:kw + W, :] for kh in range(3) for kw in range(3)]
    p = jnp.concatenate(taps, axis=-1)                        # (B, H, W, 9C), tap-major
    return p.reshape(B, H * W, 9 * C)


@jax.jit
def ox_net_forward(x_nchw, params):
    # x_nchw: (B, C, H, W) float32, same layout convention as the PyTorch module
    x = jnp.transpose(x_nchw, (0, 2, 3, 1)).astype(jnp.bfloat16)   # NHWC, bf16 early
    B, H, W, Cin = x.shape
    Cout = params["w_conv"].shape[-1]
    HW = H * W
    K = 9 * Cin
    Cp = _round_up(Cout, LANE)
    Np = _round_up(4, LANE)

    # im2col (tap-major), flattened to (B*HW, K); K stays at 36 -- no HBM inflation.
    patches = _im2col_3x3(x).reshape(B * HW, K)

    # (3,3,Cin,Cout) -> (9*Cin, Cout): same (kh, kw, cin)-major order as the taps.
    wc = params["w_conv"].reshape(K, Cout)
    wc = jnp.pad(wc, ((0, 0), (0, Cp - Cout))).astype(jnp.bfloat16)
    bc = jnp.pad(params["b_conv"], ((0, 0), (0, Cp - Cout))).astype(jnp.float32)
    # Fold the 1/HW pooling scale into the fused head weights; bf16 MXU operand.
    wh = jnp.pad(params["w_heads"] * (1.0 / HW),
                 ((0, Cp - Cout), (0, Np - 4))).astype(jnp.bfloat16)
    bh = jnp.pad(params["b_heads"], ((0, 0), (0, Np - 4))).astype(jnp.float32)

    out = run_ox_fused(patches, wc, bc, wh, bh, batch=B, hw=HW)    # (B, Np)
    return out[:, 0:1], out[:, 1:2], out[:, 2:3], out[:, 3:4]


# ----------------------------------------------------------------------------
# Pure-JAX f32 reference (sanity check for the kernel)
# ----------------------------------------------------------------------------
def ox_net_reference(x_nchw, params):
    x = jnp.transpose(x_nchw, (0, 2, 3, 1))
    y = jax.lax.conv_general_dilated(
        x, params["w_conv"], window_strides=(1, 1), padding="SAME",
        dimension_numbers=("NHWC", "HWIO", "NHWC"))
    y = jax.nn.relu(y + params["b_conv"][0][None, None, None, :])
    feats = jnp.mean(y, axis=(1, 2))
    out = feats @ params["w_heads"] + params["b_heads"][0]
    return out[:, 0:1], out[:, 1:2], out[:, 2:3], out[:, 3:4]


if __name__ == "__main__":
    # small shapes consistent with the module's forward
    B, Cin, H, W = 2, 4, 16, 16
    F = 32          # stand-in for resnet101's in_size (= 2048)

    key = jax.random.PRNGKey(0)
    k_x, k_wc, k_bc, k_wh, k_bh = jax.random.split(key, 5)

    x = jax.random.normal(k_x, (B, Cin, H, W), dtype=jnp.float32)

    params = {
        "w_conv": jax.random.normal(k_wc, (3, 3, Cin, F), dtype=jnp.float32) * 0.1,
        "b_conv": jax.random.normal(k_bc, (1, F), dtype=jnp.float32) * 0.1,
        # four fc heads fused: columns 0..3 == fc_1..fc_4 weights / biases
        "w_heads": jax.random.normal(k_wh, (F, 4), dtype=jnp.float32) * 0.1,
        "b_heads": jax.random.normal(k_bh, (1, 4), dtype=jnp.float32) * 0.1,
    }

    outs = ox_net_forward(x, params)
    outs = jax.block_until_ready(outs)

    refs = ox_net_reference(x, params)
    for o, r in zip(outs, refs):
        assert o.shape == (B, 1), o.shape
        assert jnp.allclose(o, r, rtol=2e-2, atol=2e-2), (o, r)

    print("KERNEL_OK")
</pallas_src>

<mosaic_0001>
module attributes {stable_mosaic.version = 11 : i64} {
  func.func @kernel(%arg0: i32, %arg1: memref<256x36xbf16, #tpu.memory_space<vmem>>, %arg2: memref<36x128xbf16, #tpu.memory_space<vmem>>, %arg3: memref<1x128xf32, #tpu.memory_space<vmem>>, %arg4: memref<128x128xbf16, #tpu.memory_space<vmem>>, %arg5: memref<1x128xf32, #tpu.memory_space<vmem>>, %arg6: memref<1x1x128xf32, #tpu.memory_space<vmem>>) attributes {dimension_semantics = [#tpu.dimension_semantics<parallel>], iteration_bounds = array<i64: 2>, scalar_prefetch = 0 : i64, scratch_operands = 0 : i64, tpu.core_type = #tpu.core_type<tc>, window_params = [{transform_indices = @transform_0, window_bounds = array<i64: 256, 36>}, {pipeline_mode = #tpu.pipeline_mode<synchronous>, transform_indices = @transform_1, window_bounds = array<i64: 36, 128>}, {pipeline_mode = #tpu.pipeline_mode<synchronous>, transform_indices = @transform_2, window_bounds = array<i64: 1, 128>}, {pipeline_mode = #tpu.pipeline_mode<synchronous>, transform_indices = @transform_3, window_bounds = array<i64: 128, 128>}, {pipeline_mode = #tpu.pipeline_mode<synchronous>, transform_indices = @transform_4, window_bounds = array<i64: 1, 128>}, {transform_indices = @transform_5, window_bounds = array<i64: 1, 1, 128>}]} {
    %c0 = arith.constant 0 : index
    %c0_0 = arith.constant 0 : index
    %0 = vector.load %arg1[%c0, %c0_0] : memref<256x36xbf16, #tpu.memory_space<vmem>>, vector<256x36xbf16>
    %c0_1 = arith.constant 0 : index
    %c0_2 = arith.constant 0 : index
    %1 = vector.load %arg2[%c0_1, %c0_2] : memref<36x128xbf16, #tpu.memory_space<vmem>>, vector<36x128xbf16>
    %cst = arith.constant dense<0.000000e+00> : vector<256x128xf32>
    %2 = tpu.matmul %0, %1, %cst {dimension_numbers = #tpu.dot_dimension_numbers<[1], [0], [0], [1], [0, 0, 1, 1], [], []>} : vector<256x36xbf16>, vector<36x128xbf16>, vector<256x128xf32> -> vector<256x128xf32>
    %c0_3 = arith.constant 0 : index
    %c0_4 = arith.constant 0 : index
    %3 = vector.load %arg3[%c0_3, %c0_4] : memref<1x128xf32, #tpu.memory_space<vmem>>, vector<1x128xf32>
    %4 = vector.broadcast %3 : vector<1x128xf32> to vector<256x128xf32>
    %5 = arith.addf %2, %4 : vector<256x128xf32>
    %cst_5 = arith.constant 0.000000e+00 : f32
    %6 = vector.broadcast %cst_5 : f32 to vector<256x128xf32>
    %7 = arith.maximumf %5, %6 : vector<256x128xf32>
    %8 = vector.shape_cast %7 : vector<256x128xf32> to vector<1x256x128xf32>
    %cst_6 = arith.constant dense<0.000000e+00> : vector<1x128xf32>
    %9 = vector.multi_reduction <add>, %8, %cst_6 [1] : vector<1x256x128xf32> to vector<1x128xf32>
    %10 = arith.truncf %9 : vector<1x128xf32> to vector<1x128xbf16>
    %c0_7 = arith.constant 0 : index
    %c0_8 = arith.constant 0 : index
    %11 = vector.load %arg4[%c0_7, %c0_8] : memref<128x128xbf16, #tpu.memory_space<vmem>>, vector<128x128xbf16>
    %cst_9 = arith.constant dense<0.000000e+00> : vector<1x128xf32>
    %12 = tpu.matmul %10, %11, %cst_9 {dimension_numbers = #tpu.dot_dimension_numbers<[1], [0], [0], [1], [0, 0, 1, 1], [], []>} : vector<1x128xbf16>, vector<128x128xbf16>, vector<1x128xf32> -> vector<1x128xf32>
    %c0_10 = arith.constant 0 : index
    %c0_11 = arith.constant 0 : index
    %13 = vector.load %arg5[%c0_10, %c0_11] : memref<1x128xf32, #tpu.memory_space<vmem>>, vector<1x128xf32>
    %14 = arith.addf %12, %13 : vector<1x128xf32>
    %15 = vector.shape_cast %14 : vector<1x128xf32> to vector<1x1x128xf32>
    %c0_12 = arith.constant 0 : index
    %c0_13 = arith.constant 0 : index
    %c0_14 = arith.constant 0 : index
    %16 = vector.load %arg6[%c0_12, %c0_13, %c0_14] : memref<1x1x128xf32, #tpu.memory_space<vmem>>, vector<1x1x128xf32>
    tpu.vector_store %arg6[%c0_12, %c0_13, %c0_14], %15 {strides = array<i32>} : memref<1x1x128xf32, #tpu.memory_space<vmem>>, vector<1x1x128xf32>,
    return
  }
  func.func @transform_0(%arg0: i32) -> (i32, i32) {
    %c0_i32 = arith.constant 0 : i32
    %c0_i32_0 = arith.constant 0 : i32
    return %arg0, %c0_i32 : i32, i32
  }
  func.func @transform_1(%arg0: i32) -> (i32, i32) {
    %c0_i32 = arith.constant 0 : i32
    %c0_i32_0 = arith.constant 0 : i32
    %c0_i32_1 = arith.constant 0 : i32
    return %c0_i32, %c0_i32_0 : i32, i32
  }
  func.func @transform_2(%arg0: i32) -> (i32, i32) {
    %c0_i32 = arith.constant 0 : i32
    %c0_i32_0 = arith.constant 0 : i32
    %c0_i32_1 = arith.constant 0 : i32
    return %c0_i32, %c0_i32_0 : i32, i32
  }
  func.func @transform_3(%arg0: i32) -> (i32, i32) {
    %c0_i32 = arith.constant 0 : i32
    %c0_i32_0 = arith.constant 0 : i32
    %c0_i32_1 = arith.constant 0 : i32
    return %c0_i32, %c0_i32_0 : i32, i32
  }
  func.func @transform_4(%arg0: i32) -> (i32, i32) {
    %c0_i32 = arith.constant 0 : i32
    %c0_i32_0 = arith.constant 0 : i32
    %c0_i32_1 = arith.constant 0 : i32
    return %c0_i32, %c0_i32_0 : i32, i32
  }
  func.func @transform_5(%arg0: i32) -> (i32, i32, i32) {
    %c0_i32 = arith.constant 0 : i32
    %c0_i32_0 = arith.constant 0 : i32
    %c0_i32_1 = arith.constant 0 : i32
    return %arg0, %c0_i32, %c0_i32_0 : i32, i32, i32
  }
}

</mosaic_0001>

<bundles_post_ra>
// kernel: ox_net_forward.1
= control target key start
LH: loop header
LB: loop body
LE: loop exit
PB: predicated region body
PF: predicated region fallthrough
CT: control target
= control target key end

     0   :  { %s1017_s18 = smov 0   ;;  %s1146_s0 = inlined_call_operand.vmem [shape: bf16[512,36], index: 0, kind: input, shape index: {}]   ;;  %s1147_s1 = inlined_call_operand.vmem [shape: bf16[36,128], index: 1, kind: input, shape index: {}]   ;;  %s1148_s2 = inlined_call_operand.vmem [shape: f32[1,128], index: 2, kind: input, shape index: {}]   ;;  %s1149_s3 = inlined_call_operand.vmem [shape: bf16[128,128], index: 3, kind: input, shape index: {}]   ;;  %s1150_s4 = inlined_call_operand.vmem [shape: f32[1,128], index: 4, kind: input, shape index: {}]   ;;  %s1151_s5 = inlined_call_operand.vmem [shape: f32[2,1,128], index: 5, kind: output, shape index: {}]  }
   0x1 LB: > { %s1023_s19 = sadd.s32 4294967295, %s983_s18   ;;  %p804_p0 = scmp.ge.s32.totalorder %s983_s18, 1  ;;  %s983_s18 = sphi %s1017_s18, %s15_s18  }
   0x2   : > { %p188_p1 = scmp.lt.s32.totalorder %s983_s18, 3 }
   0x4   : > { %p189_p2 = pnand %p804_p0, %p188_p1 }
   0x5   : > { %v950_v0 = vld [vmem:[%s1147_s1] sm:$0xff] (!%p189_p2)   ;;  %v951_v1 = vld [vmem:[%s1147_s1 + $0x8] sm:$0xff] (!%p189_p2)   ;;  %s805_s24 = sshll.u32 (!%p189_p2), %s1023_s19, 5  ;;  %v952_v2 = vld [vmem:[%s1147_s1 + $0x10] ss:$0 sps:$4 sm:$0x33] (!%p189_p2)  }
   0x6   : > { %192 = sbr.rel (%p189_p2) target bundleno = 528 (0x210), region = 40  ;;  %881 = vmatprep.subr.bf16.mxu0 (!%p189_p2), %v950_v0  ;;  %p215_p3 = scmp.lt.s32.totalorder (!%p189_p2), %s805_s24, 63  ;;  %vm412_vm0 = vcmask (!%p189_p2), 1041408   ;;  %vm363_vm1 = vcmask (!%p189_p2), 293888   ;;  %v969_v20 = vld [vmem:[%s1149_s3] sm:$0xff] (!%p189_p2)   ;;  %v985_v21 = vmov (!%p189_p2), 0.0  }
   0x7   : > { %882 = vmatpush3.bf16.msra.mxu0 (!%p189_p2), %v950_v0  ;;  %v414_v3 = vsel (!%p189_p2), %vm412_vm0, %v952_v2, 0  ;;  %919 = vmatprep.subr.bf16.mxu1 (!%p189_p2), %v985_v21  ;;  %v970_v22 = vld [vmem:[%s1149_s3 + $0x8] sm:$0xff] (!%p189_p2)   ;;  %v971_v23 = vld [vmem:[%s1149_s3 + $0x10] sm:$0xff] (!%p189_p2)   ;;  %v972_v24 = vld [vmem:[%s1149_s3 + $0x18] sm:$0xff] (!%p189_p2)   ;;  %vm986_vm2 = vmmov (!%p189_p2), 0   ;;  %p220_p4 = scmp.lt.s32.totalorder (!%p189_p2), %s1023_s19, 1 }
   0x8   : > { %883 = vmatprep.subr.bf16.mxu0 (!%p189_p2), %v951_v1  ;;  %920 = vmatpush3.bf16.msra.mxu1 (!%p189_p2), %v969_v20  ;;  %v973_v25 = vld [vmem:[%s1149_s3 + $0x20] sm:$0xff] (!%p189_p2)   ;;  %v974_v26 = vld [vmem:[%s1149_s3 + $0x28] sm:$0xff] (!%p189_p2)   ;;  %v975_v27 = vld [vmem:[%s1149_s3 + $0x30] sm:$0xff] (!%p189_p2)  }
   0x9   : > { %921 = vmatprep.subr.bf16.mxu1 (!%p189_p2), %v985_v21  ;;  %935 = vmatprep.mubr.msk.bf16.mxu1 (!%p189_p2), %vm986_vm2, %v985_v21  ;;  %v976_v28 = vld [vmem:[%s1149_s3 + $0x38] sm:$0xff] (!%p189_p2)   ;;  %v1101_v29 = vld [vmem:[%s1148_s2] ss:$0 sm:$0xff] (!%p189_p2) }
   0xb   : > { %884 = vmatpush3.bf16.msra.mxu0 (!%p189_p2), %v951_v1 }
   0xc   : > { %939 = vmatprep.subr.msk.bf16.mxu0 (!%p189_p2), %vm412_vm0, %v952_v2  ;;  %922 = vmatpush3.bf16.msra.mxu1 (!%p189_p2), %v970_v22 }
   0xd   : > { %s1153_s24 = smov (!%p215_p3, %s805_s24), 63  ;;  %923 = vmatprep.subr.bf16.mxu1 %v985_v21  ;;  %s1155_s19 = smov (!%p220_p4, %s1023_s19), 1 }
   0xe   : > { %s806_s27 = sshll.u32 %s1153_s24, 2 }
   0xf   : > { %s1040_s30 = scalar_lea.vmem %s1146_s0, %s806_s27  ;;  %886 = vmatpush3.bf16.msra.mxu0 %v414_v3 }
  0x10   : > { %v953_v4 = vld [vmem:[%s1040_s30] sm:$0xff]   ;;  %v954_v5 = vld [vmem:[%s1040_s30 + $0x8] sm:$0xff]   ;;  %v955_v6 = vld [vmem:[%s1040_s30 + $0x10] sm:$0xff]   ;;  %924 = vmatpush3.bf16.msra.mxu1 %v971_v23 }
  0x11   : > { %887 = vmatprep.mubr.msk.bf16.mxu0 %vm363_vm1, %v953_v4  ;;  %v956_v7 = vld [vmem:[%s1040_s30 + $0x18] sm:$0xff]   ;;  %v957_v8 = vld [vmem:[%s1040_s30 + $0x20] sm:$0xff]   ;;  %v958_v9 = vld [vmem:[%s1040_s30 + $0x28] sm:$0xff]   ;;  %925 = vmatprep.subr.bf16.mxu1 %v985_v21 }
  0x12   : > { %888 = vmatmul.mubr.msk.bf16.vlgmr.msra.gmra.mrb[0].mxu0 %vm363_vm1, %v954_v5  ;;  %v959_v10 = vld [vmem:[%s1040_s30 + $0x30] sm:$0xff]   ;;  %v960_v11 = vld [vmem:[%s1040_s30 + $0x38] sm:$0xff]   ;;  %v961_v12 = vld [vmem:[%s1040_s30 + $0x40] sm:$0xff]  }
  0x13   : > { %891 = vmatprep.mubr.msk.bf16.mxu0 %vm363_vm1, %v955_v6  ;;  %v962_v13 = vld [vmem:[%s1040_s30 + $0x48] sm:$0xff]   ;;  %v963_v14 = vld [vmem:[%s1040_s30 + $0x50] sm:$0xff]   ;;  %v964_v15 = vld [vmem:[%s1040_s30 + $0x58] sm:$0xff]  }
  0x14   : > { %v965_v16 = vld [vmem:[%s1040_s30 + $0x60] sm:$0xff]   ;;  %v966_v17 = vld [vmem:[%s1040_s30 + $0x68] sm:$0xff]   ;;  %v967_v18 = vld [vmem:[%s1040_s30 + $0x70] sm:$0xff]   ;;  %926 = vmatpush3.bf16.msra.mxu1 %v972_v24 }
  0x15   : > { %v968_v19 = vld [vmem:[%s1040_s30 + $0x78] sm:$0xff]   ;;  %927 = vmatprep.subr.bf16.mxu1 %v985_v21  ;;  %s222_s30 = scalar_lea.vmem %s1151_s5, %s1155_s19 }
  0x18   : > { %928 = vmatpush3.bf16.msra.mxu1 %v973_v25 }
  0x19   : > { %929 = vmatprep.subr.bf16.mxu1 %v985_v21 }
  0x1a   : > { %892 = vmatmul.mubr.msk.bf16.gmra.mrb[4].mxu0 %vm363_vm1, %v956_v7 }
  0x1b   : > { %895 = vmatprep.mubr.msk.bf16.mxu0 %vm363_vm1, %v957_v8 }
  0x1c   : > { %930 = vmatpush3.bf16.msra.mxu1 %v974_v26 }
  0x1d   : > { %931 = vmatprep.subr.bf16.mxu1 %v985_v21 }
  0x20   : > { %932 = vmatpush3.bf16.msra.mxu1 %v975_v27 }
  0x21   : > { %933 = vmatprep.subr.bf16.mxu1 %v985_v21 }
  0x22   : > { %896 = vmatmul.mubr.msk.bf16.gmra.mrb[8].mxu0 %vm363_vm1, %v958_v9 }
  0x23   : > { %899 = vmatprep.mubr.msk.bf16.mxu0 %vm363_vm1, %v959_v10 }
  0x24   : > { %934 = vmatpush3.bf16.msra.mxu1 %v976_v28 }
  0x2a   : > { %900 = vmatmul.mubr.msk.bf16.gmra.mrb[12].mxu0 %vm363_vm1, %v960_v11 }
  0x2b   : > { %903 = vmatprep.mubr.msk.bf16.mxu0 %vm363_vm1, %v961_v12 }
  0x32   : > { %904 = vmatmul.mubr.msk.bf16.gmra.mrb[16].mxu0 %vm363_vm1, %v962_v13 }
  0x33   : > { %907 = vmatprep.mubr.msk.bf16.mxu0 %vm363_vm1, %v963_v14 }
  0x3a   : > { %908 = vmatmul.mubr.msk.bf16.gmra.mrb[20].mxu0 %vm363_vm1, %v964_v15 }
  0x3b   : > { %911 = vmatprep.mubr.msk.bf16.mxu0 %vm363_vm1, %v965_v16 }
  0x42   : > { %912 = vmatmul.mubr.msk.bf16.gmra.mrb[24].mxu0 %vm363_vm1, %v966_v17 }
  0x43   : > { %915 = vmatprep.mubr.msk.bf16.mxu0 %vm363_vm1, %v967_v18 }
  0x4a   : > { %916 = vmatmul.mubr.msk.bf16.gmra.mrb[28].mxu0 %vm363_vm1, %v968_v19 }
  0xe5   : > { %v889_v30 = vpop.f32.mrb[0].mxu0 }
  0xe6   : > { %v450_v31 = vpop.f32.mrb[1].mxu0  ;;  %v459_v35 = vadd.f32 %v889_v30, %v1101_v29 }
  0xe7   : > { %v451_v32 = vadd.f32 %v1101_v29, %v450_v31  ;;  %v890_v33 = vpop.f32.mrb[2].mxu0 }
  0xe8   : > { %v453_v34 = vpop.f32.mrb[3].mxu0  ;;  %v462_v38 = vadd.f32 %v890_v33, %v1101_v29  ;;  %v579_v40 = vmax.f32 %v459_v35, 0.0 }
  0xe9   : > { %v454_v36 = vadd.f32 %v1101_v29, %v453_v34  ;;  %v577_v37 = vmax.f32 %v451_v32, 0.0 }
  0xea   : > { %v580_v44 = vmax.f32 %v462_v38, 0.0 }
  0xeb   : > { %v578_v39 = vmax.f32 %v454_v36, 0.0 }
  0xed   : > { %v609_v41 = vadd.f32 %v578_v39, %v577_v37  ;;  %v893_v42 = vpop.f32.mrb[4].mxu0 }
  0xee   : > { %v466_v43 = vpop.f32.mrb[5].mxu0  ;;  %v475_v49 = vadd.f32 %v893_v42, %v1101_v29 }
  0xef   : > { %v610_v45 = vadd.f32 %v609_v41, %v579_v40  ;;  %v467_v46 = vadd.f32 %v1101_v29, %v466_v43  ;;  %v894_v47 = vpop.f32.mrb[6].mxu0 }
  0xf0   : > { %v469_v48 = vpop.f32.mrb[7].mxu0  ;;  %v478_v54 = vadd.f32 %v894_v47, %v1101_v29  ;;  %v583_v56 = vmax.f32 %v475_v49, 0.0 }
  0xf1   : > { %v581_v50 = vmax.f32 %v467_v46, 0.0  ;;  %v611_v51 = vadd.f32 %v610_v45, %v580_v44  ;;  %v470_v52 = vadd.f32 %v1101_v29, %v469_v48 }
  0xf2   : > { %v584_v60 = vmax.f32 %v478_v54, 0.0 }
  0xf3   : > { %v612_v53 = vadd.f32 %v611_v51, %v581_v50  ;;  %v582_v55 = vmax.f32 %v470_v52, 0.0 }
  0xf5   : > { %v613_v57 = vadd.f32 %v612_v53, %v582_v55  ;;  %v897_v58 = vpop.f32.mrb[8].mxu0 }
  0xf6   : > { %v482_v59 = vpop.f32.mrb[9].mxu0  ;;  %v491_v1 = vadd.f32 %v897_v58, %v1101_v29 }
  0xf7   : > { %v614_v61 = vadd.f32 %v613_v57, %v583_v56  ;;  %v483_v62 = vadd.f32 %v1101_v29, %v482_v59  ;;  %v898_v63 = vpop.f32.mrb[10].mxu0 }
  0xf8   : > { %v485_v0 = vpop.f32.mrb[11].mxu0  ;;  %v494_v6 = vadd.f32 %v898_v63, %v1101_v29  ;;  %v587_v8 = vmax.f32 %v491_v1, 0.0 }
  0xf9   : > { %v585_v2 = vmax.f32 %v483_v62, 0.0  ;;  %v615_v3 = vadd.f32 %v614_v61, %v584_v60  ;;  %v486_v4 = vadd.f32 %v1101_v29, %v485_v0 }
  0xfa   : > { %v588_v12 = vmax.f32 %v494_v6, 0.0 }
  0xfb   : > { %v616_v5 = vadd.f32 %v615_v3, %v585_v2  ;;  %v586_v7 = vmax.f32 %v486_v4, 0.0 }
  0xfd   : > { %v617_v9 = vadd.f32 %v616_v5, %v586_v7  ;;  %v901_v10 = vpop.f32.mrb[12].mxu0 }
  0xfe   : > { %v498_v11 = vpop.f32.mrb[13].mxu0  ;;  %v507_v17 = vadd.f32 %v901_v10, %v1101_v29 }
  0xff   : > { %v618_v13 = vadd.f32 %v617_v9, %v587_v8  ;;  %v499_v14 = vadd.f32 %v1101_v29, %v498_v11  ;;  %v902_v15 = vpop.f32.mrb[14].mxu0 }
 0x100   : > { %v501_v16 = vpop.f32.mrb[15].mxu0  ;;  %v510_v22 = vadd.f32 %v902_v15, %v1101_v29  ;;  %v591_v24 = vmax.f32 %v507_v17, 0.0 }
 0x101   : > { %v589_v18 = vmax.f32 %v499_v14, 0.0  ;;  %v619_v19 = vadd.f32 %v618_v13, %v588_v12  ;;  %v502_v20 = vadd.f32 %v1101_v29, %v501_v16 }
 0x102   : > { %v592_v28 = vmax.f32 %v510_v22, 0.0 }
 0x103   : > { %v620_v21 = vadd.f32 %v619_v19, %v589_v18  ;;  %v590_v23 = vmax.f32 %v502_v20, 0.0 }
 0x105   : > { %v621_v25 = vadd.f32 %v620_v21, %v590_v23  ;;  %v905_v26 = vpop.f32.mrb[16].mxu0 }
 0x106   : > { %v514_v27 = vpop.f32.mrb[17].mxu0  ;;  %v523_v34 = vadd.f32 %v905_v26, %v1101_v29 }
 0x107   : > { %v622_v30 = vadd.f32 %v621_v25, %v591_v24  ;;  %v515_v31 = vadd.f32 %v1101_v29, %v514_v27  ;;  %v906_v32 = vpop.f32.mrb[18].mxu0 }
 0x108   : > { %v517_v33 = vpop.f32.mrb[19].mxu0  ;;  %v526_v39 = vadd.f32 %v906_v32, %v1101_v29  ;;  %v595_v41 = vmax.f32 %v523_v34, 0.0 }
 0x109   : > { %v593_v35 = vmax.f32 %v515_v31, 0.0  ;;  %v623_v36 = vadd.f32 %v622_v30, %v592_v28  ;;  %v518_v37 = vadd.f32 %v1101_v29, %v517_v33 }
 0x10a   : > { %v596_v45 = vmax.f32 %v526_v39, 0.0 }
 0x10b   : > { %v624_v38 = vadd.f32 %v623_v36, %v593_v35  ;;  %v594_v40 = vmax.f32 %v518_v37, 0.0 }
 0x10d   : > { %v625_v42 = vadd.f32 %v624_v38, %v594_v40  ;;  %v909_v43 = vpop.f32.mrb[20].mxu0 }
 0x10e   : > { %v530_v44 = vpop.f32.mrb[21].mxu0  ;;  %v539_v50 = vadd.f32 %v909_v43, %v1101_v29 }
 0x10f   : > { %v626_v46 = vadd.f32 %v625_v42, %v595_v41  ;;  %v531_v47 = vadd.f32 %v1101_v29, %v530_v44  ;;  %v910_v48 = vpop.f32.mrb[22].mxu0 }
 0x110   : > { %v533_v49 = vpop.f32.mrb[23].mxu0  ;;  %v542_v55 = vadd.f32 %v910_v48, %v1101_v29  ;;  %v599_v57 = vmax.f32 %v539_v50, 0.0 }
 0x111   : > { %v597_v51 = vmax.f32 %v531_v47, 0.0  ;;  %v627_v52 = vadd.f32 %v626_v46, %v596_v45  ;;  %v534_v53 = vadd.f32 %v1101_v29, %v533_v49 }
 0x112   : > { %v600_v61 = vmax.f32 %v542_v55, 0.0 }
 0x113   : > { %v628_v54 = vadd.f32 %v627_v52, %v597_v51  ;;  %v598_v56 = vmax.f32 %v534_v53, 0.0 }
 0x115   : > { %v629_v58 = vadd.f32 %v628_v54, %v598_v56  ;;  %v913_v59 = vpop.f32.mrb[24].mxu0 }
 0x116   : > { %v546_v60 = vpop.f32.mrb[25].mxu0  ;;  %v555_v2 = vadd.f32 %v913_v59, %v1101_v29 }
 0x117   : > { %v630_v62 = vadd.f32 %v629_v58, %v599_v57  ;;  %v547_v63 = vadd.f32 %v1101_v29, %v546_v60  ;;  %v914_v0 = vpop.f32.mrb[26].mxu0 }
 0x118   : > { %v549_v1 = vpop.f32.mrb[27].mxu0  ;;  %v558_v7 = vadd.f32 %v914_v0, %v1101_v29  ;;  %v603_v9 = vmax.f32 %v555_v2, 0.0 }
 0x119   : > { %v601_v3 = vmax.f32 %v547_v63, 0.0  ;;  %v631_v4 = vadd.f32 %v630_v62, %v600_v61  ;;  %v550_v5 = vadd.f32 %v1101_v29, %v549_v1 }
 0x11a   : > { %v604_v13 = vmax.f32 %v558_v7, 0.0 }
 0x11b   : > { %v632_v6 = vadd.f32 %v631_v4, %v601_v3  ;;  %v602_v8 = vmax.f32 %v550_v5, 0.0 }
 0x11d   : > { %v633_v10 = vadd.f32 %v632_v6, %v602_v8  ;;  %v917_v11 = vpop.f32.mrb[28].mxu0 }
 0x11e   : > { %v562_v12 = vpop.f32.mrb[29].mxu0  ;;  %v571_v18 = vadd.f32 %v917_v11, %v1101_v29 }
 0x11f   : > { %v634_v14 = vadd.f32 %v633_v10, %v603_v9  ;;  %v563_v15 = vadd.f32 %v1101_v29, %v562_v12  ;;  %v918_v16 = vpop.f32.mrb[30].mxu0 }
 0x120   : > { %v565_v17 = vpop.f32.mrb[31].mxu0  ;;  %v574_v23 = vadd.f32 %v918_v16, %v1101_v29  ;;  %v607_v25 = vmax.f32 %v571_v18, 0.0 }
 0x121   : > { %v605_v19 = vmax.f32 %v563_v15, 0.0  ;;  %v635_v20 = vadd.f32 %v634_v14, %v604_v13  ;;  %v566_v21 = vadd.f32 %v1101_v29, %v565_v17  ;;  %v663_v29 = vld [vmem:[%s1150_s4] sm:$0x1] }
 0x122   : > { %v608_v27 = vmax.f32 %v574_v23, 0.0 }
 0x123   : > { %v636_v22 = vadd.f32 %v635_v20, %v605_v19  ;;  %v606_v24 = vmax.f32 %v566_v21, 0.0 }
 0x125   : > { %v637_v26 = vadd.f32 %v636_v22, %v606_v24 }
 0x127   : > { %v638_v28 = vadd.f32 %v637_v26, %v607_v25 }
 0x129   : > { %v639_v30 = vadd.f32 %v638_v28, %v608_v27 }
 0x12b   : > { %v640_v31 = vrot.slane %v639_v30, 4 }
 0x12d   : > { %v641_v32 = vadd.f32 %v640_v31, %v639_v30 }
 0x12f   : > { %v642_v33 = vrot.slane %v641_v32, 2 }
 0x131   : > { %v643_v34 = vadd.f32 %v642_v33, %v641_v32 }
 0x133   : > { %v644_v35 = vrot.slane %v643_v34, 1 }
 0x135   : > { %v645_v36 = vadd.f32 %v644_v35, %v643_v34 }
 0x137   : > { %v646_v37 = vpack.c.bf16 %v645_v36, %v645_v36 }
 0x139   : > { %936 = vmatmul.mubr.bf16.vlgmr.msra.gmra.mrb[0].mxu1 %v646_v37 }
 0x20c   : > { %v746_v38 = vpop.f32.mrb[0].mxu1 }
 0x20d   : > { %v747_v39 = vadd.f32 %v746_v38, %v663_v29  ;;  %v937_v40 = vpop.f32.mrb[1].mxu1 }
 0x20e   : > { %v749_v41 = vpop.f32.mrb[2].mxu1 }
 0x20f   : > { %752 = vst [vmem:[%s222_s30] sm:$0x1] %v747_v39  ;;  %v938_v42 = vpop.f32.mrb[3].mxu1 }
 0x210 PF: > { %s15_s18 = sadd.s32 1, %s983_s18  }
 0x211   : > { %p12_p5 = scmp.ge.s32.totalorder %s15_s18, 4  }
 0x213   :  { %14 = sbr.rel (!%p12_p5) target bundleno = 1 (0x1), region = 70 }

</bundles_post_ra>
